<compile_context>
chip_gen: v6e
topology: v6e:2x2x1
jax: 0.10.0
libtpu: 0.0.40
codegen_flags: <defaults>
</compile_context>

<pallas_src>
from collections import namedtuple

import jax
import jax.numpy as jnp
from jax.experimental import pallas as pl
from jax.experimental.pallas import tpu as pltpu

FeatureOutput = namedtuple("FeatureOutput", ["relu1", "relu2", "relu3", "relu4", "relu5"])

# torchvision vgg19.features configuration
VGG19_CFG = [64, 64, "M", 128, 128, "M", 256, 256, 256, 256, "M",
             512, 512, 512, 512, "M", 512, 512, 512, 512, "M"]
# module-index -> tap name (same indices as the PyTorch layer_name_mapping)
CAPTURE = {3: "relu1", 8: "relu2", 17: "relu3", 26: "relu4", 35: "relu5"}

_VMEM_LIMIT = 32 * 1024 * 1024   # explicit scoped-VMEM limit; usage stays well below


def _round_up(x, m):
    return (x + m - 1) // m * m


def _make_chunks(tm, cout):
    """Static (offset, rows) chunks of the M tile: each f32 accumulator <= ~64 KB."""
    chunk = max(8, min(tm, (65536 // (4 * cout)) // 8 * 8))
    return [(o, min(chunk, tm - o)) for o in range(0, tm, chunk)]


# ----------------------------------------------------------------------------
# Conv3x3 (pad=1) + bias + ReLU
# ----------------------------------------------------------------------------
def _make_conv_kernel(n_taps, pitch, tm, rows_in, l_rows, r_shift, cin_eff, chunks):
    # chunk size (rows) for the dx-shift copies, bounds live vreg footprint to ~64 KB
    copy_rows = max(8, min(max(r_shift, 8), (65536 // max(1, 2 * cin_eff)) // 8 * 8))

    def kernel(x_hbm, w_ref, b_ref, o_ref, *scratch):
        if n_taps == 1:
            xbuf, sem = scratch
            xsh = ()
        else:
            xbuf, xsh1, xsh2, sem = scratch
            xsh = (xsh1, xsh2)

        n = pl.program_id(0)
        t = pl.program_id(1)
        nt = pl.num_programs(1)
        slot = t % 2

        def issue(tt, sl):
            src = pl.multiple_of(n * l_rows + tt * tm, 8)
            pltpu.make_async_copy(
                x_hbm.at[pl.ds(src, rows_in), :],
                xbuf.at[pl.ds(sl * rows_in, rows_in), :],
                sem.at[sl]).start()

        # prime slot 0 at the first tile of this image
        @pl.when(t == 0)
        def _prime():
            issue(0, 0)

        # prefetch the next tile (same image) into the other slot
        @pl.when(t + 1 < nt)
        def _prefetch_next():
            issue(t + 1, 1 - slot)

        # wait for the current tile's DMA
        pltpu.make_async_copy(
            x_hbm.at[pl.ds(0, rows_in), :],
            xbuf.at[pl.ds(slot * rows_in, rows_in), :],
            sem.at[slot]).wait()

        cur0 = pl.multiple_of(slot * rows_in, 8)

        if n_taps > 1:
            # dx in {1,2}: ONE sublane-relayout copy each (chunked), shared by all dy;
            # every later tap slice start is then a multiple of 8 (no hidden relayouts).
            for o in range(0, r_shift, copy_rows):
                s = min(copy_rows, r_shift - o)
                xsh[0][pl.ds(o, s), :] = xbuf[pl.ds(cur0 + 1 + o, s), :]
                xsh[1][pl.ds(o, s), :] = xbuf[pl.ds(cur0 + 2 + o, s), :]

        b_row = b_ref[...]                       # (1, Cout) f32, VMEM resident

        for off, sz in chunks:
            acc = None                           # accumulate in vregs, store once
            for k in range(n_taps):
                dy, dx = divmod(k, 3)
                if n_taps == 1:
                    tap = xbuf[pl.ds(pl.multiple_of(cur0 + off, 8), sz), :]
                elif dx == 0:
                    tap = xbuf[pl.ds(pl.multiple_of(cur0 + dy * pitch + off, 8), sz), :]
                else:
                    tap = xsh[dx - 1][pl.ds(dy * pitch + off, sz), :]
                d = jnp.dot(tap, w_ref[k], preferred_element_type=jnp.float32)
                acc = d if acc is None else acc + d
            # cheap finalize: bias + ReLU (f32) + cast at the store
            o_ref[pl.ds(off, sz), :] = jnp.maximum(acc + b_row, 0.0).astype(o_ref.dtype)

    return kernel


def conv3x3_relu(x_nhwc, w_hwio, b, *, tm=1024):
    """3x3 same-pad conv + bias + ReLU.  NHWC in, bf16 NHWC out."""
    N, H, W, Cin = x_nhwc.shape
    Cout = w_hwio.shape[-1]
    Hp, Wp = H + 2, W + 2
    x = x_nhwc.astype(jnp.bfloat16)
    xp = jnp.pad(x, ((0, 0), (1, 1), (1, 1), (0, 0)))          # zero pad = Conv2d(padding=1)

    if Cin < 8:
        # First layer only (Cin=3): fold taps into K=9*Cin via a cheap wrapper im2col
        # (27-channel activation) -> one MXU pass per chunk.
        pitch = Wp
        M_out = Hp * pitch
        TM = min(_round_up(tm, 8), _round_up(M_out, 8))
        num_tiles = pl.cdiv(M_out, TM)
        M_pad = num_tiles * TM
        halo = 2 * pitch + 2
        xflat = xp.reshape(N, M_out, Cin)
        src_len = M_pad + halo
        xsrc = jnp.pad(xflat, ((0, 0), (pitch + 1, src_len - (pitch + 1) - M_out), (0, 0)))
        shift_starts = [dy * pitch + dx for dy in range(3) for dx in range(3)]
        x_in = jnp.concatenate([xsrc[:, s:s + M_pad, :] for s in shift_starts], axis=-1)
        L = M_pad
        x_in = x_in.reshape(N * L, 9 * Cin)
        w_k = w_hwio.reshape(1, 9 * Cin, Cout).astype(jnp.bfloat16)
        cin_eff, n_taps, rows_in, r_shift = 9 * Cin, 1, TM, 0
    else:
        # Generic layer: activation passed once; 9 taps are slices of the haloed VMEM
        # tile.  Row pitch rounded to a multiple of 8 so dy offsets are sublane-aligned.
        pitch = _round_up(Wp, 8)
        xp = jnp.pad(xp, ((0, 0), (0, 0), (0, pitch - Wp), (0, 0)))
        M_out = Hp * pitch                                     # multiple of 8
        TM = min(_round_up(tm, 8), M_out)
        num_tiles = pl.cdiv(M_out, TM)
        M_pad = num_tiles * TM
        rows_in = TM + 2 * pitch + 8                           # haloed tile rows
        r_shift = TM + 2 * pitch                               # dx-shifted copy rows
        L = M_pad + 2 * pitch + 8                              # per-image flat rows
        xflat = xp.reshape(N, M_out, Cin)
        x_in = jnp.pad(xflat, ((0, 0), (pitch + 1, L - (pitch + 1) - M_out), (0, 0)))
        x_in = x_in.reshape(N * L, Cin)
        w_k = w_hwio.reshape(9, Cin, Cout).astype(jnp.bfloat16)
        cin_eff, n_taps = Cin, 9

    assert TM % 8 == 0 and L % 8 == 0 and rows_in % 8 == 0     # keeps multiple_of hints true

    b2 = b.reshape(1, Cout).astype(jnp.float32)
    chunks = _make_chunks(TM, Cout)
    kernel = _make_conv_kernel(n_taps, pitch, TM, rows_in, L, r_shift, cin_eff, chunks)

    scratch = [pltpu.VMEM((2 * rows_in, cin_eff), jnp.bfloat16)]     # double-buffered halo tile
    if n_taps > 1:
        scratch += [pltpu.VMEM((r_shift, cin_eff), jnp.bfloat16),    # dx = 1 shifted copy
                    pltpu.VMEM((r_shift, cin_eff), jnp.bfloat16)]    # dx = 2 shifted copy
    scratch += [pltpu.SemaphoreType.DMA((2,))]

    flops = 2 * N * M_out * 9 * Cin * Cout
    bytes_accessed = x_in.size * 2 + w_k.size * 2 + N * M_pad * Cout * 2 + Cout * 4

    out_flat = pl.pallas_call(
        kernel,
        out_shape=jax.ShapeDtypeStruct((N * M_pad, Cout), jnp.bfloat16),
        grid_spec=pltpu.PrefetchScalarGridSpec(
            num_scalar_prefetch=0,
            grid=(N, num_tiles),
            in_specs=[
                pl.BlockSpec(memory_space=pl.ANY),                    # activations (manual DMA)
                pl.BlockSpec((n_taps, cin_eff, Cout),
                             lambda n, t: (0, 0, 0)),                 # weights stay VMEM-resident
                pl.BlockSpec((1, Cout), lambda n, t: (0, 0)),         # bias stays VMEM-resident
            ],
            out_specs=pl.BlockSpec((TM, Cout),
                                   lambda n, t: (n * num_tiles + t, 0)),
            scratch_shapes=scratch,
        ),
        compiler_params=pltpu.CompilerParams(
            dimension_semantics=("parallel", "arbitrary"),
            vmem_limit_bytes=_VMEM_LIMIT),
        cost_estimate=pl.CostEstimate(flops=flops, transcendentals=0,
                                      bytes_accessed=bytes_accessed),
    )(x_in, w_k, b2)

    out = out_flat.reshape(N, M_pad, Cout)[:, :M_out, :]
    out = out.reshape(N, Hp, pitch, Cout)[:, 1:H + 1, 1:W + 1, :]
    return out


# ----------------------------------------------------------------------------
# MaxPool2d(kernel=2, stride=2)
# ----------------------------------------------------------------------------
def _make_pool_kernel(C):
    def kernel(x_ref, o_ref):
        a = x_ref[:, 0, :, :]                                  # even rows   (TR, Wh, 2C)
        b = x_ref[:, 1, :, :]                                  # odd rows
        m = jnp.maximum(a, b)
        o_ref[...] = jnp.maximum(m[..., :C], m[..., C:])       # column pairs = lane halves
    return kernel


def maxpool2x2(x_nhwc):
    N, H, W, C = x_nhwc.shape
    Hh, Wh = H // 2, W // 2
    x = x_nhwc[:, :Hh * 2, :Wh * 2, :]                         # floor, like nn.MaxPool2d(2, 2)
    # contiguity-preserving reshape: (N,H,W,C) -> (N*Hh, 2, Wh, 2C).
    rows = N * Hh
    x4 = x.reshape(rows, 2, Wh, 2 * C)
    row_bytes = 2 * Wh * 2 * C * x.dtype.itemsize
    tr = max(1, (8 * 1024 * 1024) // row_bytes)                # ~8 MiB blocks
    if rows >= 2:
        tr = min(tr, pl.cdiv(rows, 2))                         # >= 2 grid steps (v7x: both TCs)
    tr = min(tr, rows)
    grid = (pl.cdiv(rows, tr),)                                # remainder tile handled by Pallas
    out = pl.pallas_call(
        _make_pool_kernel(C),
        out_shape=jax.ShapeDtypeStruct((rows, Wh, C), x.dtype),
        grid_spec=pltpu.PrefetchScalarGridSpec(
            num_scalar_prefetch=0,
            grid=grid,
            in_specs=[pl.BlockSpec((tr, 2, Wh, 2 * C), lambda i: (i, 0, 0, 0))],
            out_specs=pl.BlockSpec((tr, Wh, C), lambda i: (i, 0, 0)),
        ),
        compiler_params=pltpu.CompilerParams(
            dimension_semantics=("parallel",),
            vmem_limit_bytes=_VMEM_LIMIT),
    )(x4)
    return out.reshape(N, Hh, Wh, C)


# ----------------------------------------------------------------------------
# Parameter init (deterministic, Kaiming-style) and forward pass.
# ----------------------------------------------------------------------------
def init_vgg19_params(key, in_ch=3):
    params = []
    c = in_ch
    for v in VGG19_CFG:
        if v == "M":
            continue
        key, kw = jax.random.split(key)
        fan_in = 9 * c
        std = (2.0 / fan_in) ** 0.5
        w = jax.random.normal(kw, (3, 3, c, v), jnp.float32) * std   # HWIO
        b = jnp.zeros((v,), jnp.float32)
        params.append((w, b))
        c = v
    return params


def feature_extractor(x_nchw, params):
    """Mirrors FeatureExtractor.forward; x is NCHW, outputs are NCHW f32."""
    x = jnp.transpose(x_nchw, (0, 2, 3, 1)).astype(jnp.bfloat16)     # -> NHWC, bf16 activations
    outputs = {}
    idx = 0   # module index inside vgg19.features
    pi = 0
    for v in VGG19_CFG:
        if v == "M":
            x = maxpool2x2(x)
            idx += 1
        else:
            w, b = params[pi]
            pi += 1
            x = conv3x3_relu(x, w, b)
            idx += 2                      # Conv2d module + ReLU module
            relu_idx = idx - 1
            if relu_idx in CAPTURE:
                outputs[CAPTURE[relu_idx]] = jnp.transpose(x, (0, 3, 1, 2)).astype(jnp.float32)
        if len(outputs) == len(CAPTURE):
            break
    return FeatureOutput(**outputs)


if __name__ == "__main__":
    key = jax.random.PRNGKey(0)
    kparam, kx, k1, k2, k3 = jax.random.split(key, 5)

    # --- unit checks vs XLA references (loose tolerance: bf16 matmul operands) ---
    xc = jax.random.normal(k1, (2, 10, 12, 3), jnp.float32)
    wc = jax.random.normal(k2, (3, 3, 3, 64), jnp.float32) * 0.2
    bc = jax.random.normal(k3, (64,), jnp.float32) * 0.1
    got = conv3x3_relu(xc, wc, bc).astype(jnp.float32)
    ref = jnp.maximum(
        jax.lax.conv_general_dilated(xc, wc, (1, 1), "SAME",
                                     dimension_numbers=("NHWC", "HWIO", "NHWC")) + bc, 0.0)
    assert jnp.allclose(got, ref, atol=0.1, rtol=0.1), "conv (im2col path) mismatch"

    xg = jax.random.normal(k1, (2, 9, 11, 64), jnp.float32)
    wg = jax.random.normal(k2, (3, 3, 64, 32), jnp.float32) * 0.05
    bg = jax.random.normal(k3, (32,), jnp.float32) * 0.1
    refg = jnp.maximum(
        jax.lax.conv_general_dilated(xg, wg, (1, 1), "SAME",
                                     dimension_numbers=("NHWC", "HWIO", "NHWC")) + bg, 0.0)
    got = conv3x3_relu(xg, wg, bg).astype(jnp.float32)
    assert jnp.allclose(got, refg, atol=0.1, rtol=0.1), "conv (halo path) mismatch"
    # force multiple M tiles to exercise the double-buffered DMA + shifted-copy path
    got = conv3x3_relu(xg, wg, bg, tm=96).astype(jnp.float32)
    assert jnp.allclose(got, refg, atol=0.1, rtol=0.1), "conv (multi-tile halo path) mismatch"

    xpool = jax.random.normal(k1, (2, 7, 9, 64), jnp.float32).astype(jnp.bfloat16)
    gotp = maxpool2x2(xpool).astype(jnp.float32)
    refp = jnp.max(xpool[:, :6, :8, :].reshape(2, 3, 2, 4, 2, 64), axis=(2, 4)).astype(jnp.float32)
    assert jnp.allclose(gotp, refp), "maxpool mismatch"

    # --- full FeatureExtractor forward ---
    params = init_vgg19_params(kparam, in_ch=3)
    x = jax.random.normal(kx, (2, 3, 32, 32), jnp.float32)   # NCHW like PyTorch

    fwd = jax.jit(feature_extractor)
    out = jax.block_until_ready(fwd(x, params))

    # sanity: shapes follow VGG19 taps (channels 64/128/256/512/512, /2 spatial per block)
    assert out.relu1.shape == (2, 64, 32, 32)
    assert out.relu2.shape == (2, 128, 16, 16)
    assert out.relu3.shape == (2, 256, 8, 8)
    assert out.relu4.shape == (2, 512, 4, 4)
    assert out.relu5.shape == (2, 512, 2, 2)
    for tap in out:
        assert bool(jnp.all(jnp.isfinite(tap)))

    print("KERNEL_OK")
</pallas_src>

<mosaic_0001>
module attributes {stable_mosaic.version = 11 : i64} {
  func.func @kernel(%arg0: i32, %arg1: i32, %arg2: memref<336x27xbf16, #tpu.memory_space<any>>, %arg3: memref<1x27x64xbf16, #tpu.memory_space<vmem>>, %arg4: memref<1x64xf32, #tpu.memory_space<vmem>>, %arg5: memref<168x64xbf16, #tpu.memory_space<vmem>>, %arg6: memref<336x27xbf16, #tpu.memory_space<vmem>>, %arg7: memref<2x!tpu.dma_semaphore, #tpu.memory_space<semaphore_mem>>) attributes {dimension_semantics = [#tpu.dimension_semantics<parallel>, #tpu.dimension_semantics<arbitrary>], iteration_bounds = array<i64: 2, 1>, scalar_prefetch = 0 : i64, scratch_operands = 2 : i64, tpu.core_type = #tpu.core_type<tc>, window_params = [{}, {pipeline_mode = #tpu.pipeline_mode<synchronous>, transform_indices = @transform_1, window_bounds = array<i64: 1, 27, 64>}, {pipeline_mode = #tpu.pipeline_mode<synchronous>, transform_indices = @transform_2, window_bounds = array<i64: 1, 64>}, {transform_indices = @transform_3, window_bounds = array<i64: 168, 64>}]} {
    %c2_i32 = arith.constant 2 : i32
    %c0_i32 = arith.constant 0 : i32
    %0 = arith.cmpi eq, %c2_i32, %c0_i32 : i32
    %c1_i32 = arith.constant 1 : i32
    %1 = arith.select %0, %c1_i32, %c2_i32 : i32
    %2 = arith.remsi %arg1, %1 : i32
    %c0_i32_0 = arith.constant 0 : i32
    %3 = arith.cmpi ne, %2, %c0_i32_0 : i32
    %c0_i32_1 = arith.constant 0 : i32
    %4 = arith.cmpi slt, %2, %c0_i32_1 : i32
    %c0_i32_2 = arith.constant 0 : i32
    %5 = arith.cmpi slt, %1, %c0_i32_2 : i32
    %6 = arith.xori %4, %5 : i1
    %7 = arith.andi %6, %3 : i1
    %8 = arith.addi %2, %1 : i32
    %9 = arith.select %7, %8, %2 : i32
    %c0_i32_3 = arith.constant 0 : i32
    %10 = arith.cmpi eq, %arg1, %c0_i32_3 : i32
    %11 = arith.extui %10 : i1 to i32
    %c0_i32_4 = arith.constant 0 : i32
    %12 = arith.cmpi ne, %11, %c0_i32_4 : i32
    scf.if %12 {
      %c168_i32_21 = arith.constant 168 : i32
      %38 = arith.muli %arg0, %c168_i32_21 : i32
      %c0_i32_22 = arith.constant 0 : i32
      %39 = arith.addi %38, %c0_i32_22 : i32
      %40 = tpu.assume_multiple %39, 8 : i32
      %c0_i32_23 = arith.constant 0 : i32
      %c0_i32_24 = arith.constant 0 : i32
      %41 = tpu.memref_slice %arg2[%40, %c0_i32_24] : memref<336x27xbf16, #tpu.memory_space<any>> -> memref<168x27xbf16, #tpu.memory_space<any>>
      %c0_i32_25 = arith.constant 0 : i32
      %c0_i32_26 = arith.constant 0 : i32
      %42 = tpu.memref_slice %arg6[%c0_i32_25, %c0_i32_26] : memref<336x27xbf16, #tpu.memory_space<vmem>> -> memref<168x27xbf16, #tpu.memory_space<vmem>>
      %43 = tpu.memref_slice %arg7[%c0_i32_23] : memref<2x!tpu.dma_semaphore, #tpu.memory_space<semaphore_mem>> -> memref<1x!tpu.dma_semaphore, #tpu.memory_space<semaphore_mem>>
      %44 = tpu.memref_squeeze %43 : memref<1x!tpu.dma_semaphore, #tpu.memory_space<semaphore_mem>> -> memref<!tpu.dma_semaphore, #tpu.memory_space<semaphore_mem>>
      tpu.enqueue_dma source(%41 : memref<168x27xbf16, #tpu.memory_space<any>>) target(%42 : memref<168x27xbf16, #tpu.memory_space<vmem>>) target_semaphore(%44 : memref<!tpu.dma_semaphore, #tpu.memory_space<semaphore_mem>>)
    } else {
    }
    %c1_i32_5 = arith.constant 1 : i32
    %13 = arith.addi %arg1, %c1_i32_5 : i32
    %c1_i32_6 = arith.constant 1 : i32
    %14 = arith.cmpi slt, %13, %c1_i32_6 : i32
    %15 = arith.extui %14 : i1 to i32
    %c0_i32_7 = arith.constant 0 : i32
    %16 = arith.cmpi ne, %15, %c0_i32_7 : i32
    scf.if %16 {
      %c1_i32_21 = arith.constant 1 : i32
      %38 = arith.addi %arg1, %c1_i32_21 : i32
      %c1_i32_22 = arith.constant 1 : i32
      %39 = arith.subi %c1_i32_22, %9 : i32
      %c168_i32_23 = arith.constant 168 : i32
      %40 = arith.muli %arg0, %c168_i32_23 : i32
      %c168_i32_24 = arith.constant 168 : i32
      %41 = arith.muli %38, %c168_i32_24 : i32
      %42 = arith.addi %40, %41 : i32
      %43 = tpu.assume_multiple %42, 8 : i32
      %c168_i32_25 = arith.constant 168 : i32
      %44 = arith.muli %39, %c168_i32_25 : i32
      %c0_i32_26 = arith.constant 0 : i32
      %45 = tpu.memref_slice %arg2[%43, %c0_i32_26] : memref<336x27xbf16, #tpu.memory_space<any>> -> memref<168x27xbf16, #tpu.memory_space<any>>
      %c0_i32_27 = arith.constant 0 : i32
      %46 = tpu.memref_slice %arg6[%44, %c0_i32_27] : memref<336x27xbf16, #tpu.memory_space<vmem>> -> memref<168x27xbf16, #tpu.memory_space<vmem>>
      %47 = tpu.memref_slice %arg7[%39] : memref<2x!tpu.dma_semaphore, #tpu.memory_space<semaphore_mem>> -> memref<1x!tpu.dma_semaphore, #tpu.memory_space<semaphore_mem>>
      %48 = tpu.memref_squeeze %47 : memref<1x!tpu.dma_semaphore, #tpu.memory_space<semaphore_mem>> -> memref<!tpu.dma_semaphore, #tpu.memory_space<semaphore_mem>>
      tpu.enqueue_dma source(%45 : memref<168x27xbf16, #tpu.memory_space<any>>) target(%46 : memref<168x27xbf16, #tpu.memory_space<vmem>>) target_semaphore(%48 : memref<!tpu.dma_semaphore, #tpu.memory_space<semaphore_mem>>)
    } else {
    }
    %c168_i32 = arith.constant 168 : i32
    %17 = arith.muli %9, %c168_i32 : i32
    %c0_i32_8 = arith.constant 0 : i32
    %c0_i32_9 = arith.constant 0 : i32
    %18 = tpu.memref_slice %arg2[%c0_i32_8, %c0_i32_9] : memref<336x27xbf16, #tpu.memory_space<any>> -> memref<168x27xbf16, #tpu.memory_space<any>>
    %c0_i32_10 = arith.constant 0 : i32
    %19 = tpu.memref_slice %arg6[%17, %c0_i32_10] : memref<336x27xbf16, #tpu.memory_space<vmem>> -> memref<168x27xbf16, #tpu.memory_space<vmem>>
    %20 = tpu.memref_slice %arg7[%9] : memref<2x!tpu.dma_semaphore, #tpu.memory_space<semaphore_mem>> -> memref<1x!tpu.dma_semaphore, #tpu.memory_space<semaphore_mem>>
    %21 = tpu.memref_squeeze %20 : memref<1x!tpu.dma_semaphore, #tpu.memory_space<semaphore_mem>> -> memref<!tpu.dma_semaphore, #tpu.memory_space<semaphore_mem>>
    tpu.wait_dma2 semaphore(%21 : memref<!tpu.dma_semaphore, #tpu.memory_space<semaphore_mem>>) src(%18 : memref<168x27xbf16, #tpu.memory_space<any>>) dst(%19 : memref<168x27xbf16, #tpu.memory_space<vmem>>)
    %c168_i32_11 = arith.constant 168 : i32
    %22 = arith.muli %9, %c168_i32_11 : i32
    %23 = tpu.assume_multiple %22, 8 : i32
    %c0 = arith.constant 0 : index
    %c0_12 = arith.constant 0 : index
    %24 = vector.load %arg4[%c0, %c0_12] : memref<1x64xf32, #tpu.memory_space<vmem>>, vector<1x64xf32>
    %c0_i32_13 = arith.constant 0 : i32
    %25 = arith.addi %23, %c0_i32_13 : i32
    %26 = tpu.assume_multiple %25, 8 : i32
    %27 = arith.index_cast %26 : i32 to index
    %c0_14 = arith.constant 0 : index
    %28 = vector.load %arg6[%27, %c0_14] : memref<336x27xbf16, #tpu.memory_space<vmem>>, vector<168x27xbf16>
    %c0_15 = arith.constant 0 : index
    %c0_16 = arith.constant 0 : index
    %c0_17 = arith.constant 0 : index
    %29 = vector.load %arg3[%c0_15, %c0_16, %c0_17] : memref<1x27x64xbf16, #tpu.memory_space<vmem>>, vector<1x27x64xbf16>
    %30 = vector.shape_cast %29 : vector<1x27x64xbf16> to vector<27x64xbf16>
    %cst = arith.constant dense<0.000000e+00> : vector<168x64xf32>
    %31 = tpu.matmul %28, %30, %cst {dimension_numbers = #tpu.dot_dimension_numbers<[1], [0], [0], [1], [0, 0, 1, 1], [], []>} : vector<168x27xbf16>, vector<27x64xbf16>, vector<168x64xf32> -> vector<168x64xf32>
    %32 = vector.broadcast %24 : vector<1x64xf32> to vector<168x64xf32>
    %33 = arith.addf %31, %32 : vector<168x64xf32>
    %cst_18 = arith.constant 0.000000e+00 : f32
    %34 = vector.broadcast %cst_18 : f32 to vector<168x64xf32>
    %35 = arith.maximumf %33, %34 : vector<168x64xf32>
    %36 = arith.truncf %35 : vector<168x64xf32> to vector<168x64xbf16>
    %c0_19 = arith.constant 0 : index
    %c0_20 = arith.constant 0 : index
    %37 = vector.load %arg5[%c0_19, %c0_20] : memref<168x64xbf16, #tpu.memory_space<vmem>>, vector<168x64xbf16>
    tpu.vector_store %arg5[%c0_19, %c0_20], %36 {strides = array<i32>} : memref<168x64xbf16, #tpu.memory_space<vmem>>, vector<168x64xbf16>,
    return
  }
  func.func @transform_1(%arg0: i32, %arg1: i32) -> (i32, i32, i32) {
    %c0_i32 = arith.constant 0 : i32
    %c0_i32_0 = arith.constant 0 : i32
    %c0_i32_1 = arith.constant 0 : i32
    %c0_i32_2 = arith.constant 0 : i32
    return %c0_i32, %c0_i32_0, %c0_i32_1 : i32, i32, i32
  }
  func.func @transform_2(%arg0: i32, %arg1: i32) -> (i32, i32) {
    %c0_i32 = arith.constant 0 : i32
    %c0_i32_0 = arith.constant 0 : i32
    %c0_i32_1 = arith.constant 0 : i32
    return %c0_i32, %c0_i32_0 : i32, i32
  }
  func.func @transform_3(%arg0: i32, %arg1: i32) -> (i32, i32) {
    %c1_i32 = arith.constant 1 : i32
    %0 = arith.muli %arg0, %c1_i32 : i32
    %1 = arith.addi %0, %arg1 : i32
    %c0_i32 = arith.constant 0 : i32
    %c0_i32_0 = arith.constant 0 : i32
    return %1, %c0_i32 : i32, i32
  }
}

</mosaic_0001>

<bundles_post_ra>
// kernel: tpu_custom_call.1
= control target key start
LH: loop header
LB: loop body
LE: loop exit
PB: predicated region body
PF: predicated region fallthrough
CT: control target
= control target key end

     0   :  { %s1081_s12 = smov 0   ;;  %s1083_s13 = smov 0   ;;  %s1212_s0 = inlined_call_operand.vmem [shape: bf16[336,27], index: 0, kind: input, shape index: {}]   ;;  %s1213_s1 = inlined_call_operand.vmem [shape: bf16[1,27,64], index: 1, kind: input, shape index: {}]   ;;  %s1214_s2 = inlined_call_operand.vmem [shape: f32[1,64], index: 2, kind: input, shape index: {}]   ;;  %s1215_s3 = inlined_call_operand.vmem [shape: bf16[336,64], index: 3, kind: output, shape index: {}]  }
   0x1   :  { %s1085_s14 = smov 0  }
   0x2 LB: > { %s25_s15 = sadd.s32 1, %s1052_s13  ;;  %p837_p0 = scmp.ge.s32.totalorder %s1056_s14, 1  ;;  %s1056_s14 = sphi %s1085_s14, %s13_s14   ;;  %s1052_s13 = sphi %s1083_s13, %s1217_s13   ;;  %s1048_s12 = sphi %s1081_s12, %s1216_s12  }
   0x3   : > { %p27_p1 = scmp.ge.s32.totalorder %s25_s15, 2  ;;  %p117_p2 = scmp.lt.s32.totalorder %s1056_s14, 3 }
   0x5   : > { %s1219_s15 = smov (%p27_p1, %s25_s15), 0  ;;  %p118_p3 = pnand %p837_p0, %p117_p2 }
   0x6   : > { %s136_s16 = smul.u32 (!%p118_p3), 21, %s1048_s12 }
   0x7   : > { %121 = sbr.rel (%p118_p3) target bundleno = 279 (0x117), region = 28 }
   0x8   : > { %s160_s17 = smul.u32 (!%p118_p3), 168, %s1048_s12  ;;  %p137_p4 = scmp.lt.s32.totalorder (!%p118_p3), %s136_s16, 41 }
   0xa   : > { %s161_s18 = sshra.s32 (!%p118_p3), %s160_s17, 3 }
   0xb   : > { %s839_s19 = sshll.u32 (!%p118_p3), %s161_s18, 2 }
   0xc   : > { %s1221_s16 = smov (!%p137_p4, %s136_s16), 41  ;;  %s164_s23 = scalar_lea.vmem %s1212_s0, %s839_s19 }
   0xd   : > { %s838_s20 = sshll.u32 %s1221_s16, 2  ;;  %v203_v0 = vld [vmem:[%s164_s23] sm:$0xff]  ;;  %v205_v1 = vld [vmem:[%s164_s23 + $0x8] sm:$0xff]  ;;  %v207_v2 = vld [vmem:[%s164_s23 + $0x10] sm:$0xff] }
   0xe   : > { %s1105_s26 = scalar_lea.vmem %s1215_s3, %s838_s20  ;;  %204 = vst [vmem:[#allocation2] sm:$0xff] %v203_v0  ;;  %206 = vst [vmem:[#allocation2 + $0x8] sm:$0xff] %v205_v1  ;;  %v209_v3 = vld [vmem:[%s164_s23 + $0x18] sm:$0xff]  ;;  %v211_v4 = vld [vmem:[%s164_s23 + $0x20] sm:$0xff] }
   0xf   : > { %208 = vst [vmem:[#allocation2 + $0x10] sm:$0xff] %v207_v2  ;;  %v213_v5 = vld [vmem:[%s164_s23 + $0x28] sm:$0xff]  ;;  %210 = vst [vmem:[#allocation2 + $0x18] sm:$0xff] %v209_v3  ;;  %v215_v6 = vld [vmem:[%s164_s23 + $0x30] sm:$0xff] }
  0x10   : > { %212 = vst [vmem:[#allocation2 + $0x20] sm:$0xff] %v211_v4  ;;  %214 = vst [vmem:[#allocation2 + $0x28] sm:$0xff] %v213_v5  ;;  %v217_v7 = vld [vmem:[%s164_s23 + $0x38] sm:$0xff]  ;;  %v219_v8 = vld [vmem:[%s164_s23 + $0x40] sm:$0xff] }
  0x11   : > { %216 = vst [vmem:[#allocation2 + $0x30] sm:$0xff] %v215_v6  ;;  %218 = vst [vmem:[#allocation2 + $0x38] sm:$0xff] %v217_v7  ;;  %v221_v9 = vld [vmem:[%s164_s23 + $0x48] sm:$0xff]  ;;  %v840_v10 = vld [vmem:[%s164_s23 + $0x50] sm:$0xf] }
  0x12   : > { %220 = vst [vmem:[#allocation2 + $0x40] sm:$0xff] %v219_v8  ;;  %222 = vst [vmem:[#allocation2 + $0x48] sm:$0xff] %v221_v9 }
  0x13   : > { %234 = vst [vmem:[#allocation2 + $0x50] sm:$0xf] %v840_v10 }
  0x14   : > { %238 = vsyncadd [#allocation3], 1344 }
  0x15   : > { %1044 = dma.done.wait [#allocation3], 1344 }
  0x16   : > { %1045 = vsyncadd [#allocation3], 4294965952  ;;  %vm472_vm0 = vcmask 1044480   ;;  %v1058_v11 = vmov 0.0   ;;  %vm1059_vm1 = vmmov 0   ;;  %vm473_vm2 = vcmask 1045504  }
  0x17   : > { %940 = vmatprep.subr.bf16.mxu0 %v1058_v11  ;;  %988 = vmatprep.subr.bf16.mxu1 %v1058_v11  ;;  %v1060_v12 = vmov 65535   ;;  %v1019_v15 = vld [vmem:[%s1213_s1 + $0x8] sm:$0x3f]   ;;  %v1020_v17 = vld [vmem:[%s1213_s1] sm:$0xff]   ;;  %vm438_vm3 = vcmask 220160   ;;  %v1025_v22 = vld [vmem:[#allocation2 + $0x10] sm:$0xff]  }
  0x18   : > { %944 = vmatprep.mubr.msk.bf16.mxu0 %vm1059_vm1, %v1058_v11  ;;  %968 = vmatprep.mubr.msk.bf16.mxu1 %vm1059_vm1, %v1058_v11  ;;  %v474_v13 = vsel %vm472_vm0, 4294967295, %v1060_v12  ;;  %v1021_v18 = vld [vmem:[#allocation2] sm:$0xff]   ;;  %v1022_v19 = vld [vmem:[#allocation2 + $0x30] sm:$0xff]   ;;  %v1023_v20 = vld [vmem:[#allocation2 + $0x8] sm:$0xff]   ;;  %vm705_vm4 = vcmask 519168  }
  0x19   : > { %v475_v14 = vsel %vm473_vm2, %v474_v13, 0  ;;  %v1024_v21 = vld [vmem:[#allocation2 + $0x38] sm:$0xff]   ;;  %v1026_v23 = vld [vmem:[#allocation2 + $0x40] sm:$0xff]   ;;  %v1028_v25 = vld [vmem:[#allocation2 + $0x48] sm:$0xff]  }
  0x1a   : > { %v477_v16 = vand.u32 %v1019_v15, %v475_v14  ;;  %v1027_v24 = vld [vmem:[#allocation2 + $0x18] sm:$0xff]   ;;  %v1029_v26 = vld [vmem:[#allocation2 + $0x20] sm:$0xff]   ;;  %v1030_v27 = vld [vmem:[#allocation2 + $0x50] ss:$0 sps:$4 sm:$0xff]  }
  0x1b   : > { %v1031_v28 = vld [vmem:[#allocation2 + $0x28] sm:$0xff]   ;;  %v1138_v29 = vld [vmem:[%s1214_s2] ss:$0 sm:$0xff] }
  0x1c   : > { %941 = vmatpush3.bf16.msra.mxu0 %v477_v16  ;;  %990 = vmatpush3.bf16.msra.mxu1 %v477_v16 }
  0x1d   : > { %942 = vmatprep.subr.bf16.mxu0 %v1058_v11  ;;  %989 = vmatprep.subr.bf16.mxu1 %v1058_v11 }
  0x20   : > { %943 = vmatpush3.bf16.msra.mxu0 %v1020_v17  ;;  %991 = vmatpush3.bf16.msra.mxu1 %v1020_v17 }
  0x23   : > { %945 = vmatmul.mubr.msk.bf16.vlgmr.msra.gmra.mxu0 %vm438_vm3, %v1021_v18  ;;  %969 = vmatmul.mubr.msk.bf16.vlgmr.msra.gmra.mxu1 %vm438_vm3, %v1022_v19 }
  0x24   : > { %948 = vmatprep.mubr.msk.bf16.mxu0 %vm1059_vm1, %v1058_v11  ;;  %972 = vmatprep.mubr.msk.bf16.mxu1 %vm1059_vm1, %v1058_v11 }
  0x2b   : > { %949 = vmatmul.mubr.msk.bf16.gmra.mxu0 %vm438_vm3, %v1023_v20  ;;  %973 = vmatmul.mubr.msk.bf16.gmra.mxu1 %vm438_vm3, %v1024_v21 }
  0x2c   : > { %952 = vmatprep.mubr.msk.bf16.mxu0 %vm1059_vm1, %v1058_v11  ;;  %976 = vmatprep.mubr.msk.bf16.mxu1 %vm1059_vm1, %v1058_v11 }
  0x33   : > { %953 = vmatmul.mubr.msk.bf16.gmra.mxu0 %vm438_vm3, %v1025_v22  ;;  %977 = vmatmul.mubr.msk.bf16.gmra.mxu1 %vm438_vm3, %v1026_v23 }
  0x34   : > { %956 = vmatprep.mubr.msk.bf16.mxu0 %vm1059_vm1, %v1058_v11  ;;  %980 = vmatprep.mubr.msk.bf16.mxu1 %vm1059_vm1, %v1058_v11 }
  0x3b   : > { %957 = vmatmul.mubr.msk.bf16.gmra.mxu0 %vm438_vm3, %v1027_v24  ;;  %981 = vmatmul.mubr.msk.bf16.gmra.mxu1 %vm438_vm3, %v1028_v25 }
  0x3c   : > { %960 = vmatprep.mubr.msk.bf16.mxu0 %vm1059_vm1, %v1058_v11  ;;  %984 = vmatprep.mubr.msk.bf16.mxu1 %vm1059_vm1, %v1058_v11 }
  0x43   : > { %961 = vmatmul.mubr.msk.bf16.gmra.mxu0 %vm438_vm3, %v1029_v26  ;;  %985 = vmatmul.mubr.msk.bf16.gmra.mxu1 %vm438_vm3, %v1030_v27 }
  0x44   : > { %964 = vmatprep.mubr.msk.bf16.mxu0 %vm1059_vm1, %v1058_v11 }
  0x4b   : > { %965 = vmatmul.mubr.msk.bf16.gmra.mxu0 %vm438_vm3, %v1031_v28 }
  0xe3   : > { %v513_v30 = vpop.f32.mrf.mxu0  ;;  %v561_v31 = vpop.f32.mrf.mxu1 }
  0xe4   : > { %v514_v32 = vadd.f32 %v1138_v29, %v513_v30  ;;  %v562_v33 = vadd.f32 %v1138_v29, %v561_v31 }
  0xe5   : > { %v946_v34 = vpop.f32.mrf.mxu0  ;;  %v970_v35 = vpop.f32.mrf.mxu1 }
  0xe6   : > { %v599_v36 = vmax.f32 %v514_v32, 0.0  ;;  %v611_v37 = vmax.f32 %v562_v33, 0.0 }
  0xe7   : > { %v516_v38 = vpop.f32.mrf.mxu0  ;;  %v564_v39 = vpop.f32.mrf.mxu1 }
  0xe8   : > { %v906_v40 = vpack.c.bf16 %v599_v36, %v599_v36  ;;  %v517_v41 = vadd.f32 %v1138_v29, %v516_v38  ;;  %v918_v42 = vpack.c.bf16 %v611_v37, %v611_v37  ;;  %v565_v43 = vadd.f32 %v1138_v29, %v564_v39 }
  0xe9   : > { %v947_v44 = vpop.f32.mrf.mxu0  ;;  %v971_v45 = vpop.f32.mrf.mxu1 }
  0xea   : > { %706 = vst.msk [vmem:[%s1105_s26] sm:$0xf] %vm705_vm4, %v906_v40  ;;  %v600_v46 = vmax.f32 %v517_v41, 0.0  ;;  %718 = vst.msk [vmem:[%s1105_s26 + $0x30] sm:$0xf] %vm705_vm4, %v918_v42  ;;  %v612_v47 = vmax.f32 %v565_v43, 0.0 }
  0xeb   : > { %v521_v48 = vpop.f32.mrf.mxu0  ;;  %v569_v49 = vpop.f32.mrf.mxu1 }
  0xec   : > { %v907_v50 = vpack.c.bf16 %v600_v46, %v600_v46  ;;  %v522_v51 = vadd.f32 %v1138_v29, %v521_v48  ;;  %v919_v52 = vpack.c.bf16 %v612_v47, %v612_v47  ;;  %v570_v53 = vadd.f32 %v1138_v29, %v569_v49 }
  0xed   : > { %v950_v54 = vpop.f32.mrf.mxu0  ;;  %v974_v55 = vpop.f32.mrf.mxu1 }
  0xee   : > { %707 = vst.msk [vmem:[%s1105_s26 + $0x4] sm:$0xf] %vm705_vm4, %v907_v50  ;;  %v601_v56 = vmax.f32 %v522_v51, 0.0  ;;  %719 = vst.msk [vmem:[%s1105_s26 + $0x34] sm:$0xf] %vm705_vm4, %v919_v52  ;;  %v613_v57 = vmax.f32 %v570_v53, 0.0 }
  0xef   : > { %v524_v58 = vpop.f32.mrf.mxu0  ;;  %v572_v59 = vpop.f32.mrf.mxu1 }
  0xf0   : > { %v908_v60 = vpack.c.bf16 %v601_v56, %v601_v56  ;;  %v525_v61 = vadd.f32 %v1138_v29, %v524_v58  ;;  %v920_v62 = vpack.c.bf16 %v613_v57, %v613_v57  ;;  %v573_v63 = vadd.f32 %v1138_v29, %v572_v59 }
  0xf1   : > { %v951_v0 = vpop.f32.mrf.mxu0  ;;  %v975_v1 = vpop.f32.mrf.mxu1 }
  0xf2   : > { %708 = vst.msk [vmem:[%s1105_s26 + $0x8] sm:$0xf] %vm705_vm4, %v908_v60  ;;  %v602_v2 = vmax.f32 %v525_v61, 0.0  ;;  %720 = vst.msk [vmem:[%s1105_s26 + $0x38] sm:$0xf] %vm705_vm4, %v920_v62  ;;  %v614_v3 = vmax.f32 %v573_v63, 0.0 }
  0xf3   : > { %v529_v4 = vpop.f32.mrf.mxu0  ;;  %v577_v5 = vpop.f32.mrf.mxu1 }
  0xf4   : > { %v909_v6 = vpack.c.bf16 %v602_v2, %v602_v2  ;;  %v530_v7 = vadd.f32 %v1138_v29, %v529_v4  ;;  %v921_v8 = vpack.c.bf16 %v614_v3, %v614_v3  ;;  %v578_v9 = vadd.f32 %v1138_v29, %v577_v5 }
  0xf5   : > { %v954_v10 = vpop.f32.mrf.mxu0  ;;  %v978_v11 = vpop.f32.mrf.mxu1 }
  0xf6   : > { %709 = vst.msk [vmem:[%s1105_s26 + $0xc] sm:$0xf] %vm705_vm4, %v909_v6  ;;  %v603_v12 = vmax.f32 %v530_v7, 0.0  ;;  %721 = vst.msk [vmem:[%s1105_s26 + $0x3c] sm:$0xf] %vm705_vm4, %v921_v8  ;;  %v615_v13 = vmax.f32 %v578_v9, 0.0 }
  0xf7   : > { %v532_v14 = vpop.f32.mrf.mxu0  ;;  %v580_v15 = vpop.f32.mrf.mxu1 }
  0xf8   : > { %v910_v16 = vpack.c.bf16 %v603_v12, %v603_v12  ;;  %v533_v17 = vadd.f32 %v1138_v29, %v532_v14  ;;  %v922_v18 = vpack.c.bf16 %v615_v13, %v615_v13  ;;  %v581_v19 = vadd.f32 %v1138_v29, %v580_v15 }
  0xf9   : > { %v955_v20 = vpop.f32.mrf.mxu0  ;;  %v979_v21 = vpop.f32.mrf.mxu1 }
  0xfa   : > { %710 = vst.msk [vmem:[%s1105_s26 + $0x10] sm:$0xf] %vm705_vm4, %v910_v16  ;;  %v604_v22 = vmax.f32 %v533_v17, 0.0  ;;  %722 = vst.msk [vmem:[%s1105_s26 + $0x40] sm:$0xf] %vm705_vm4, %v922_v18  ;;  %v616_v23 = vmax.f32 %v581_v19, 0.0 }
  0xfb   : > { %v537_v24 = vpop.f32.mrf.mxu0  ;;  %v585_v25 = vpop.f32.mrf.mxu1 }
  0xfc   : > { %v911_v26 = vpack.c.bf16 %v604_v22, %v604_v22  ;;  %v538_v27 = vadd.f32 %v1138_v29, %v537_v24  ;;  %v923_v28 = vpack.c.bf16 %v616_v23, %v616_v23  ;;  %v586_v30 = vadd.f32 %v1138_v29, %v585_v25 }
  0xfd   : > { %v958_v31 = vpop.f32.mrf.mxu0  ;;  %v982_v32 = vpop.f32.mrf.mxu1 }
  0xfe   : > { %711 = vst.msk [vmem:[%s1105_s26 + $0x14] sm:$0xf] %vm705_vm4, %v911_v26  ;;  %v605_v33 = vmax.f32 %v538_v27, 0.0  ;;  %723 = vst.msk [vmem:[%s1105_s26 + $0x44] sm:$0xf] %vm705_vm4, %v923_v28  ;;  %v617_v34 = vmax.f32 %v586_v30, 0.0 }
  0xff   : > { %v540_v35 = vpop.f32.mrf.mxu0  ;;  %v588_v36 = vpop.f32.mrf.mxu1 }
 0x100   : > { %v912_v37 = vpack.c.bf16 %v605_v33, %v605_v33  ;;  %v541_v38 = vadd.f32 %v1138_v29, %v540_v35  ;;  %v924_v39 = vpack.c.bf16 %v617_v34, %v617_v34  ;;  %v589_v40 = vadd.f32 %v1138_v29, %v588_v36 }
 0x101   : > { %v959_v41 = vpop.f32.mrf.mxu0  ;;  %v983_v42 = vpop.f32.mrf.mxu1 }
 0x102   : > { %712 = vst.msk [vmem:[%s1105_s26 + $0x18] sm:$0xf] %vm705_vm4, %v912_v37  ;;  %v606_v43 = vmax.f32 %v541_v38, 0.0  ;;  %724 = vst.msk [vmem:[%s1105_s26 + $0x48] sm:$0xf] %vm705_vm4, %v924_v39  ;;  %v618_v44 = vmax.f32 %v589_v40, 0.0 }
 0x103   : > { %v545_v45 = vpop.f32.mrf.mxu0  ;;  %v593_v46 = vpop.f32.mrf.mxu1 }
 0x104   : > { %v913_v47 = vpack.c.bf16 %v606_v43, %v606_v43  ;;  %v546_v48 = vadd.f32 %v1138_v29, %v545_v45  ;;  %v925_v49 = vpack.c.bf16 %v618_v44, %v618_v44  ;;  %v594_v50 = vadd.f32 %v1138_v29, %v593_v46 }
 0x105   : > { %v962_v51 = vpop.f32.mrf.mxu0  ;;  %v986_v52 = vpop.f32.mrf.mxu1 }
 0x106   : > { %713 = vst.msk [vmem:[%s1105_s26 + $0x1c] sm:$0xf] %vm705_vm4, %v913_v47  ;;  %v607_v53 = vmax.f32 %v546_v48, 0.0  ;;  %725 = vst.msk [vmem:[%s1105_s26 + $0x4c] sm:$0xf] %vm705_vm4, %v925_v49  ;;  %v619_v54 = vmax.f32 %v594_v50, 0.0 }
 0x107   : > { %v548_v55 = vpop.f32.mrf.mxu0  ;;  %v596_v56 = vpop.f32.mrf.mxu1 }
 0x108   : > { %v914_v57 = vpack.c.bf16 %v607_v53, %v607_v53  ;;  %v549_v58 = vadd.f32 %v1138_v29, %v548_v55  ;;  %v926_v59 = vpack.c.bf16 %v619_v54, %v619_v54 }
 0x109   : > { %v963_v60 = vpop.f32.mrf.mxu0  ;;  %v987_v61 = vpop.f32.mrf.mxu1 }
 0x10a   : > { %714 = vst.msk [vmem:[%s1105_s26 + $0x20] sm:$0xf] %vm705_vm4, %v914_v57  ;;  %v608_v62 = vmax.f32 %v549_v58, 0.0  ;;  %726 = vst.msk [vmem:[%s1105_s26 + $0x50] sm:$0xf] %vm705_vm4, %v926_v59 }
 0x10b   : > { %v553_v63 = vpop.f32.mrf.mxu0 }
 0x10c   : > { %v915_v0 = vpack.c.bf16 %v608_v62, %v608_v62  ;;  %v554_v1 = vadd.f32 %v1138_v29, %v553_v63 }
 0x10d   : > { %v966_v2 = vpop.f32.mrf.mxu0 }
 0x10e   : > { %715 = vst.msk [vmem:[%s1105_s26 + $0x24] sm:$0xf] %vm705_vm4, %v915_v0  ;;  %v609_v3 = vmax.f32 %v554_v1, 0.0 }
 0x10f   : > { %v556_v4 = vpop.f32.mrf.mxu0 }
 0x110   : > { %v916_v5 = vpack.c.bf16 %v609_v3, %v609_v3  ;;  %v557_v6 = vadd.f32 %v1138_v29, %v556_v4 }
 0x111   : > { %v967_v7 = vpop.f32.mrf.mxu0 }
 0x112   : > { %716 = vst.msk [vmem:[%s1105_s26 + $0x28] sm:$0xf] %vm705_vm4, %v916_v5  ;;  %v610_v8 = vmax.f32 %v557_v6, 0.0 }
 0x114   : > { %v917_v9 = vpack.c.bf16 %v610_v8, %v610_v8 }
 0x116   : > { %717 = vst.msk [vmem:[%s1105_s26 + $0x2c] sm:$0xf] %vm705_vm4, %v917_v9 }
 0x117 PF: > { %s13_s14 = sadd.s32 1, %s1056_s14   ;;  %s1216_s12 = smov %s1052_s13 }
 0x118   : > { %p10_p5 = scmp.ge.s32.totalorder %s13_s14, 4   ;;  %s1217_s13 = smov %s1219_s15 }
 0x11a   :  { %12 = sbr.rel (!%p10_p5) target bundleno = 2 (0x2), region = 172 }
 0x11f   :  { %752 = vsyncmov [#allocation3] }
 0x122   :  { %s753_s6 = vpop.sfrf %752 }
 0x123   :  { %p904_p6 = scmp.ne.s32.totalorder %s753_s6, 0 }
 0x125   :  { %757 = shalt.err (%p904_p6)  }
 0x126   :  { %759 = vsyncmov [#allocation3 + $0x1] }
 0x129   :  { %s760_s7 = vpop.sfrf %759 }
 0x12a   :  { %p905_p7 = scmp.ne.s32.totalorder %s760_s7, 0 }
 0x12c   :  { %764 = shalt.err (%p905_p7)  }

</bundles_post_ra>
